<compile_context>
chip_gen: v7x
topology: tpu7x:2x2x1
jax: 0.10.0
libtpu: 0.0.40
codegen_flags: <defaults>
</compile_context>

<pallas_src>
import functools

import jax
import jax.numpy as jnp
import numpy as np
from jax.experimental import pallas as pl
from jax.experimental.pallas import tpu as pltpu


def _round_up(x, m):
    return -(-x // m) * m


def _reduce_treegru_kernel(sp,
                           left_ref, right_ref, th_ref,
                           wrz_ref, uw_ref, bg_ref, vl_ref, vr_ref,
                           h_ref):
    left = left_ref[...]                      # (bb, sp) f32
    right = right_ref[...]                    # (bb, sp) f32
    hprev = left + right

    # Gate pre-activations: two summed MXU pushes, no lane-axis concat.
    # u3 holds [Ur | Uz | Uc] in three 128-aligned lane slabs (+ fused biases),
    # w2 holds [Wr | Wz] in two 128-aligned lane slabs.
    u3 = jnp.dot(th_ref[...].astype(jnp.bfloat16), uw_ref[...],
                 preferred_element_type=jnp.float32) + bg_ref[...]   # (bb, 3*sp)
    w2 = jnp.dot(hprev.astype(jnp.bfloat16), wrz_ref[...],
                 preferred_element_type=jnp.float32)                 # (bb, 2*sp)

    rz = jax.nn.sigmoid(u3[:, :2 * sp] + w2)   # lane-aligned slice -> free view
    r = rz[:, :sp]
    z = rz[:, sp:]
    uc = u3[:, 2 * sp:]

    # Candidate: two summed MXU pushes (Vl, Vr), no concat.
    v = (jnp.dot((left * r).astype(jnp.bfloat16), vl_ref[...],
                 preferred_element_type=jnp.float32)
         + jnp.dot((right * r).astype(jnp.bfloat16), vr_ref[...],
                   preferred_element_type=jnp.float32))

    c = jnp.tanh(uc + v)
    h_ref[...] = hprev + z * (c - hprev)       # lane-dense (sp % 128 == 0) store


def prepare_params(params, *, size, tracker_size):
    """One-time layout/fusion of the four Linear layers into kernel operands.

    Call at parameter-init / load time, NOT per forward call.
      * each gate (r, z, c) gets its own 128-lane-aligned column slab,
      * W bias + U bias are folded into one gate bias; Vl/Vr biases are folded
        into the c-slab bias,
      * weights are stored bf16 (MXU-native); biases stay f32.
    """
    sp = _round_up(size, 128)           # per-gate lane slab
    tp = _round_up(tracker_size, 128)   # tracker lane width

    wt = params["W_weight"].T.astype(jnp.float32)   # (size, 2*size) -> [r | z]
    ut = params["U_weight"].T.astype(jnp.float32)   # (tracker, 3*size) -> [Ur|Uz|Uc]

    wrz = jnp.zeros((sp, 2 * sp), jnp.float32)
    wrz = wrz.at[:size, :size].set(wt[:, :size])                      # r slab
    wrz = wrz.at[:size, sp:sp + size].set(wt[:, size:2 * size])       # z slab

    uw = jnp.zeros((tp, 3 * sp), jnp.float32)
    uw = uw.at[:tracker_size, :size].set(ut[:, :size])                # Ur slab
    uw = uw.at[:tracker_size, sp:sp + size].set(ut[:, size:2 * size]) # Uz slab
    uw = uw.at[:tracker_size, 2 * sp:2 * sp + size].set(ut[:, 2 * size:])  # Uc slab

    bw = params["W_bias"].astype(jnp.float32)
    bu = params["U_bias"].astype(jnp.float32)
    bg = jnp.zeros((1, 3 * sp), jnp.float32)
    bg = bg.at[0, :size].set(bw[:size] + bu[:size])                            # r
    bg = bg.at[0, sp:sp + size].set(bw[size:] + bu[size:2 * size])             # z
    bg = bg.at[0, 2 * sp:2 * sp + size].set(                                   # c
        bu[2 * size:] + params["Vl_bias"].astype(jnp.float32)
        + params["Vr_bias"].astype(jnp.float32))

    vl = jnp.zeros((sp, sp), jnp.float32).at[:size, :size].set(
        params["Vl_weight"].T.astype(jnp.float32))
    vr = jnp.zeros((sp, sp), jnp.float32).at[:size, :size].set(
        params["Vr_weight"].T.astype(jnp.float32))

    return {
        "wrz": wrz.astype(jnp.bfloat16),
        "uw": uw.astype(jnp.bfloat16),
        "bg": bg,
        "vl": vl.astype(jnp.bfloat16),
        "vr": vr.astype(jnp.bfloat16),
        "sp": sp,
        "tp": tp,
    }


def reduce_treegru(left, right, tracking_h, fused, *, size, block_b=None):
    """left, right: (B, size); tracking_h: (B, tracker); fused from prepare_params."""
    B = left.shape[0]
    tracker = tracking_h.shape[1]
    sp, tp = fused["sp"], fused["tp"]

    if block_b is None:
        bp8 = _round_up(B, 8)
        if bp8 <= 256:
            block_b = bp8                     # single tile; launch-bound regime
        else:
            # keep >=2 grid steps (v7x: shard the parallel axis across 2 TCs),
            # tiles capped at 512 rows (>=~85% of HBM roofline per measurements).
            block_b = min(512, _round_up(-(-bp8 // 2), 8))
    block_b = max(8, (block_b // 8) * 8)      # f32 sublane multiple
    bp = _round_up(B, block_b)

    # Zero-pad activations to lane-aligned widths and to the batch-tile multiple
    # (zeros keep the padded rows/cols finite; they are sliced off below).
    left = jnp.pad(left.astype(jnp.float32), ((0, bp - B), (0, sp - size)))
    right = jnp.pad(right.astype(jnp.float32), ((0, bp - B), (0, sp - size)))
    tracking_h = jnp.pad(tracking_h.astype(jnp.float32),
                         ((0, bp - B), (0, tp - tracker)))

    grid = (bp // block_b,)

    weight_bytes = 2 * (sp * 2 * sp + tp * 3 * sp + 2 * sp * sp) + 4 * 3 * sp
    cost = pl.CostEstimate(
        flops=2 * bp * (sp * 2 * sp + tp * 3 * sp + 2 * sp * sp),
        transcendentals=3 * bp * sp,
        bytes_accessed=4 * bp * (2 * sp + tp + sp) + weight_bytes,
    )

    h = pl.pallas_call(
        functools.partial(_reduce_treegru_kernel, sp),
        out_shape=jax.ShapeDtypeStruct((bp, sp), jnp.float32),
        grid=grid,
        in_specs=[
            pl.BlockSpec((block_b, sp), lambda i: (i, 0)),    # left
            pl.BlockSpec((block_b, sp), lambda i: (i, 0)),    # right
            pl.BlockSpec((block_b, tp), lambda i: (i, 0)),    # tracking_h
            pl.BlockSpec((sp, 2 * sp), lambda i: (0, 0)),     # W^T  [r|z]   (resident)
            pl.BlockSpec((tp, 3 * sp), lambda i: (0, 0)),     # U^T  [r|z|c] (resident)
            pl.BlockSpec((1, 3 * sp), lambda i: (0, 0)),      # fused bias   (resident)
            pl.BlockSpec((sp, sp), lambda i: (0, 0)),         # Vl^T         (resident)
            pl.BlockSpec((sp, sp), lambda i: (0, 0)),         # Vr^T         (resident)
        ],
        out_specs=pl.BlockSpec((block_b, sp), lambda i: (i, 0)),
        compiler_params=pltpu.CompilerParams(
            dimension_semantics=("parallel",),
            vmem_limit_bytes=32 * 1024 * 1024),
        cost_estimate=cost,
    )(left, right, tracking_h,
      fused["wrz"], fused["uw"], fused["bg"], fused["vl"], fused["vr"])

    return h[:B, :size]


def reference(left, right, tracking_h, params, *, size):
    hprev = left + right
    w = hprev @ params["W_weight"].T + params["W_bias"]
    r, z = w[:, :size], w[:, size:]
    u = tracking_h @ params["U_weight"].T + params["U_bias"]
    ur, uz, uc = u[:, :size], u[:, size:2 * size], u[:, 2 * size:]
    r = jax.nn.sigmoid(ur + r)
    z = jax.nn.sigmoid(uz + z)
    c = jnp.tanh(uc
                 + (left * r) @ params["Vl_weight"].T + params["Vl_bias"]
                 + (right * r) @ params["Vr_weight"].T + params["Vr_bias"])
    return hprev + z * (c - hprev)


def init_params(key, size, tracker_size):
    """Deterministic synthetic init (kaiming-normal-like weights, zero bias)."""
    ks = jax.random.split(key, 4)

    def kaiming(k, out_f, in_f):
        std = np.sqrt(2.0 / in_f)
        return jax.random.normal(k, (out_f, in_f), jnp.float32) * std

    return {
        "W_weight": kaiming(ks[0], 2 * size, size),
        "W_bias": jnp.zeros((2 * size,), jnp.float32),
        "Vl_weight": kaiming(ks[1], size, size),
        "Vl_bias": jnp.zeros((size,), jnp.float32),
        "Vr_weight": kaiming(ks[2], size, size),
        "Vr_bias": jnp.zeros((size,), jnp.float32),
        "U_weight": kaiming(ks[3], 3 * size, tracker_size),
        "U_bias": jnp.zeros((3 * size,), jnp.float32),
    }


if __name__ == "__main__":
    B, SIZE, TRACKER = 8, 32, 16

    key = jax.random.PRNGKey(0)
    k_left, k_right, k_track, k_par = jax.random.split(key, 4)

    # In PyTorch these are lists of B tensors of shape (1, SIZE); here we build
    # the concatenated (B, SIZE) arrays directly (that concat is host glue).
    left = jax.random.normal(k_left, (B, SIZE), jnp.float32)
    right = jax.random.normal(k_right, (B, SIZE), jnp.float32)

    # tracking: bundle of B states of shape (1, 2*TRACKER); .h is second half.
    tracking_both = jax.random.normal(k_track, (B, 2 * TRACKER), jnp.float32)
    tracking_h = tracking_both[:, TRACKER:]

    params = init_params(k_par, SIZE, TRACKER)
    fused = prepare_params(params, size=SIZE, tracker_size=TRACKER)  # once, at init

    h = reduce_treegru(left, right, tracking_h, fused, size=SIZE)
    h = jax.block_until_ready(h)

    # Reference is pure f32; the kernel uses bf16 matmul operands (f32 accum),
    # so compare at bf16-appropriate tolerance.
    h_ref = reference(left, right, tracking_h, params, size=SIZE)
    np.testing.assert_allclose(np.asarray(h), np.asarray(h_ref),
                               rtol=5e-2, atol=5e-2)

    # torch.chunk(h, batch_size, 0) equivalent (pure glue):
    chunks = jnp.split(h, B, axis=0)
    assert len(chunks) == B and chunks[0].shape == (1, SIZE)

    print("KERNEL_OK")
</pallas_src>

<mosaic_0001>
module attributes {stable_mosaic.version = 11 : i64} {
  func.func @_reduce_treegru_kernel(%arg0: i32, %arg1: memref<8x128xf32, #tpu.memory_space<vmem>>, %arg2: memref<8x128xf32, #tpu.memory_space<vmem>>, %arg3: memref<8x128xf32, #tpu.memory_space<vmem>>, %arg4: memref<128x256xbf16, #tpu.memory_space<vmem>>, %arg5: memref<128x384xbf16, #tpu.memory_space<vmem>>, %arg6: memref<1x384xf32, #tpu.memory_space<vmem>>, %arg7: memref<128x128xbf16, #tpu.memory_space<vmem>>, %arg8: memref<128x128xbf16, #tpu.memory_space<vmem>>, %arg9: memref<8x128xf32, #tpu.memory_space<vmem>>) attributes {dimension_semantics = [#tpu.dimension_semantics<parallel>], iteration_bounds = array<i64: 1>, scalar_prefetch = 0 : i64, scratch_operands = 0 : i64, tpu.core_type = #tpu.core_type<tc>, window_params = [{transform_indices = @transform_0, window_bounds = array<i64: 8, 128>}, {transform_indices = @transform_1, window_bounds = array<i64: 8, 128>}, {transform_indices = @transform_2, window_bounds = array<i64: 8, 128>}, {pipeline_mode = #tpu.pipeline_mode<synchronous>, transform_indices = @transform_3, window_bounds = array<i64: 128, 256>}, {pipeline_mode = #tpu.pipeline_mode<synchronous>, transform_indices = @transform_4, window_bounds = array<i64: 128, 384>}, {pipeline_mode = #tpu.pipeline_mode<synchronous>, transform_indices = @transform_5, window_bounds = array<i64: 1, 384>}, {pipeline_mode = #tpu.pipeline_mode<synchronous>, transform_indices = @transform_6, window_bounds = array<i64: 128, 128>}, {pipeline_mode = #tpu.pipeline_mode<synchronous>, transform_indices = @transform_7, window_bounds = array<i64: 128, 128>}, {transform_indices = @transform_8, window_bounds = array<i64: 8, 128>}]} {
    %c0 = arith.constant 0 : index
    %c0_0 = arith.constant 0 : index
    %0 = vector.load %arg1[%c0, %c0_0] : memref<8x128xf32, #tpu.memory_space<vmem>>, vector<8x128xf32>
    %c0_1 = arith.constant 0 : index
    %c0_2 = arith.constant 0 : index
    %1 = vector.load %arg2[%c0_1, %c0_2] : memref<8x128xf32, #tpu.memory_space<vmem>>, vector<8x128xf32>
    %2 = arith.addf %0, %1 : vector<8x128xf32>
    %c0_3 = arith.constant 0 : index
    %c0_4 = arith.constant 0 : index
    %3 = vector.load %arg3[%c0_3, %c0_4] : memref<8x128xf32, #tpu.memory_space<vmem>>, vector<8x128xf32>
    %4 = arith.truncf %3 : vector<8x128xf32> to vector<8x128xbf16>
    %c0_5 = arith.constant 0 : index
    %c0_6 = arith.constant 0 : index
    %5 = vector.load %arg5[%c0_5, %c0_6] : memref<128x384xbf16, #tpu.memory_space<vmem>>, vector<128x384xbf16>
    %cst = arith.constant dense<0.000000e+00> : vector<8x384xf32>
    %6 = tpu.matmul %4, %5, %cst {dimension_numbers = #tpu.dot_dimension_numbers<[1], [0], [0], [1], [0, 0, 1, 1], [], []>} : vector<8x128xbf16>, vector<128x384xbf16>, vector<8x384xf32> -> vector<8x384xf32>
    %c0_7 = arith.constant 0 : index
    %c0_8 = arith.constant 0 : index
    %7 = vector.load %arg6[%c0_7, %c0_8] : memref<1x384xf32, #tpu.memory_space<vmem>>, vector<1x384xf32>
    %8 = vector.broadcast %7 : vector<1x384xf32> to vector<8x384xf32>
    %9 = arith.addf %6, %8 : vector<8x384xf32>
    %10 = arith.truncf %2 : vector<8x128xf32> to vector<8x128xbf16>
    %c0_9 = arith.constant 0 : index
    %c0_10 = arith.constant 0 : index
    %11 = vector.load %arg4[%c0_9, %c0_10] : memref<128x256xbf16, #tpu.memory_space<vmem>>, vector<128x256xbf16>
    %cst_11 = arith.constant dense<0.000000e+00> : vector<8x256xf32>
    %12 = tpu.matmul %10, %11, %cst_11 {dimension_numbers = #tpu.dot_dimension_numbers<[1], [0], [0], [1], [0, 0, 1, 1], [], []>} : vector<8x128xbf16>, vector<128x256xbf16>, vector<8x256xf32> -> vector<8x256xf32>
    %13 = vector.extract_strided_slice %9 {offsets = [0, 0], sizes = [8, 256], strides = [1, 1]} : vector<8x384xf32> to vector<8x256xf32>
    %14 = arith.addf %13, %12 : vector<8x256xf32>
    %15 = arith.negf %14 : vector<8x256xf32>
    %16 = math.exp %15 : vector<8x256xf32>
    %cst_12 = arith.constant 1.000000e+00 : f32
    %17 = vector.broadcast %cst_12 : f32 to vector<8x256xf32>
    %18 = arith.addf %17, %16 : vector<8x256xf32>
    %19 = arith.divf %17, %18 : vector<8x256xf32>
    %20 = vector.extract_strided_slice %19 {offsets = [0, 0], sizes = [8, 128], strides = [1, 1]} : vector<8x256xf32> to vector<8x128xf32>
    %21 = vector.extract_strided_slice %19 {offsets = [0, 128], sizes = [8, 128], strides = [1, 1]} : vector<8x256xf32> to vector<8x128xf32>
    %22 = vector.extract_strided_slice %9 {offsets = [0, 256], sizes = [8, 128], strides = [1, 1]} : vector<8x384xf32> to vector<8x128xf32>
    %23 = arith.mulf %0, %20 : vector<8x128xf32>
    %24 = arith.truncf %23 : vector<8x128xf32> to vector<8x128xbf16>
    %c0_13 = arith.constant 0 : index
    %c0_14 = arith.constant 0 : index
    %25 = vector.load %arg7[%c0_13, %c0_14] : memref<128x128xbf16, #tpu.memory_space<vmem>>, vector<128x128xbf16>
    %cst_15 = arith.constant dense<0.000000e+00> : vector<8x128xf32>
    %26 = tpu.matmul %24, %25, %cst_15 {dimension_numbers = #tpu.dot_dimension_numbers<[1], [0], [0], [1], [0, 0, 1, 1], [], []>} : vector<8x128xbf16>, vector<128x128xbf16>, vector<8x128xf32> -> vector<8x128xf32>
    %27 = arith.mulf %1, %20 : vector<8x128xf32>
    %28 = arith.truncf %27 : vector<8x128xf32> to vector<8x128xbf16>
    %c0_16 = arith.constant 0 : index
    %c0_17 = arith.constant 0 : index
    %29 = vector.load %arg8[%c0_16, %c0_17] : memref<128x128xbf16, #tpu.memory_space<vmem>>, vector<128x128xbf16>
    %cst_18 = arith.constant dense<0.000000e+00> : vector<8x128xf32>
    %30 = tpu.matmul %28, %29, %cst_18 {dimension_numbers = #tpu.dot_dimension_numbers<[1], [0], [0], [1], [0, 0, 1, 1], [], []>} : vector<8x128xbf16>, vector<128x128xbf16>, vector<8x128xf32> -> vector<8x128xf32>
    %31 = arith.addf %26, %30 : vector<8x128xf32>
    %32 = arith.addf %22, %31 : vector<8x128xf32>
    %33 = math.tanh %32 : vector<8x128xf32>
    %34 = arith.subf %33, %2 : vector<8x128xf32>
    %35 = arith.mulf %21, %34 : vector<8x128xf32>
    %36 = arith.addf %2, %35 : vector<8x128xf32>
    %c0_19 = arith.constant 0 : index
    %c0_20 = arith.constant 0 : index
    %37 = vector.load %arg9[%c0_19, %c0_20] : memref<8x128xf32, #tpu.memory_space<vmem>>, vector<8x128xf32>
    tpu.vector_store %arg9[%c0_19, %c0_20], %36 {strides = array<i32>} : memref<8x128xf32, #tpu.memory_space<vmem>>, vector<8x128xf32>,
    return
  }
  func.func @transform_0(%arg0: i32) -> (i32, i32) {
    %c0_i32 = arith.constant 0 : i32
    %c0_i32_0 = arith.constant 0 : i32
    return %arg0, %c0_i32 : i32, i32
  }
  func.func @transform_1(%arg0: i32) -> (i32, i32) {
    %c0_i32 = arith.constant 0 : i32
    %c0_i32_0 = arith.constant 0 : i32
    return %arg0, %c0_i32 : i32, i32
  }
  func.func @transform_2(%arg0: i32) -> (i32, i32) {
    %c0_i32 = arith.constant 0 : i32
    %c0_i32_0 = arith.constant 0 : i32
    return %arg0, %c0_i32 : i32, i32
  }
  func.func @transform_3(%arg0: i32) -> (i32, i32) {
    %c0_i32 = arith.constant 0 : i32
    %c0_i32_0 = arith.constant 0 : i32
    %c0_i32_1 = arith.constant 0 : i32
    return %c0_i32, %c0_i32_0 : i32, i32
  }
  func.func @transform_4(%arg0: i32) -> (i32, i32) {
    %c0_i32 = arith.constant 0 : i32
    %c0_i32_0 = arith.constant 0 : i32
    %c0_i32_1 = arith.constant 0 : i32
    return %c0_i32, %c0_i32_0 : i32, i32
  }
  func.func @transform_5(%arg0: i32) -> (i32, i32) {
    %c0_i32 = arith.constant 0 : i32
    %c0_i32_0 = arith.constant 0 : i32
    %c0_i32_1 = arith.constant 0 : i32
    return %c0_i32, %c0_i32_0 : i32, i32
  }
  func.func @transform_6(%arg0: i32) -> (i32, i32) {
    %c0_i32 = arith.constant 0 : i32
    %c0_i32_0 = arith.constant 0 : i32
    %c0_i32_1 = arith.constant 0 : i32
    return %c0_i32, %c0_i32_0 : i32, i32
  }
  func.func @transform_7(%arg0: i32) -> (i32, i32) {
    %c0_i32 = arith.constant 0 : i32
    %c0_i32_0 = arith.constant 0 : i32
    %c0_i32_1 = arith.constant 0 : i32
    return %c0_i32, %c0_i32_0 : i32, i32
  }
  func.func @transform_8(%arg0: i32) -> (i32, i32) {
    %c0_i32 = arith.constant 0 : i32
    %c0_i32_0 = arith.constant 0 : i32
    return %arg0, %c0_i32 : i32, i32
  }
}

</mosaic_0001>

<bundles_post_ra>
// kernel: tpu_custom_call.1
= control target key start
LH: loop header
LB: loop body
LE: loop exit
PB: predicated region body
PF: predicated region fallthrough
CT: control target
= control target key end

     0   :  { %13 = vsyncpa [#allocation3], 0  ;;  %s1430_s0 = inlined_call_operand.hbm [shape: f32[8,128], index: 0, kind: input, shape index: {}]   ;;  %s1431_s1 = inlined_call_operand.hbm [shape: f32[8,128], index: 1, kind: input, shape index: {}]   ;;  %s1432_s2 = inlined_call_operand.hbm [shape: f32[8,128], index: 2, kind: input, shape index: {}]   ;;  %s1433_s3 = inlined_call_operand.hbm [shape: bf16[128,256], index: 3, kind: input, shape index: {}]   ;;  %s1434_s4 = inlined_call_operand.hbm [shape: bf16[128,384], index: 4, kind: input, shape index: {}]   ;;  %s1435_s5 = inlined_call_operand.vmem [shape: f32[1,384], index: 5, kind: input, shape index: {}]   ;;  %s1436_s6 = inlined_call_operand.hbm [shape: bf16[128,128], index: 6, kind: input, shape index: {}]   ;;  %s1437_s7 = inlined_call_operand.hbm [shape: bf16[128,128], index: 7, kind: input, shape index: {}]   ;;  %s1438_s8 = inlined_call_operand.hbm [shape: f32[8,128], index: 8, kind: output, shape index: {}]  }
   0x1   :  { %14 = vsyncpa [#allocation6], 0 }
   0x2   :  { %15 = vsyncpa [#allocation9], 0 }
   0x3   :  { %16 = vsyncpa [#allocation12], 0 }
   0x4   :  { %17 = vsyncpa [#allocation4], 0  ;;  %s1216_s27 = smov [#allocation5]   ;;  %s1217_s29 = smov [#allocation8]  }
   0x5   :  { %s34_s28 = sshll.u32 %s1216_s27, 4  ;;  %s53_s30 = sshll.u32 %s1217_s29, 4  ;;  %s35_s28 = int_to_ptr.vmem [resolvable:$true] %s34_s28  ;;  %s1278_s30 = int_to_ptr.vmem [resolvable:$true] %s53_s30 }
   0x6   :  { %s1030_s11 = scalar_lea.hbm %s1431_s1, 128 }
   0x7   :  { %p1031_p0 = scmp.ne.s32.totalorder %s1431_s1, %s1030_s11  ;;  %p1034_p1 = scmp.lt.u32.totalorder %s1030_s11, %s1431_s1 }
   0x9   :  { %p1036_p2 = pnand %p1034_p1, %p1031_p0 }
   0xb   :  { %1039 = shalt.err (!%p1036_p2)
}
   0xc   :  { %s1040_s16 = scalar_lea.vmem %s35_s28, 128  ;;  %p1045_p4 = scmp.lt.s32.totalorder %s35_s28, %s35_s28 }
   0xd   :  { %p1041_p3 = scmp.ne.s32.totalorder %s35_s28, %s1040_s16  ;;  %p1046_p5 = scmp.lt.s32.totalorder %s1040_s16, %s1040_s16 }
   0xf   :  { %p1047_p6 = por %p1046_p5, %p1045_p4 }
  0x11   :  { %p1048_p7 = pnand %p1047_p6, %p1041_p3 }
  0x13   :  { %1051 = shalt.err (!%p1048_p7)
}
  0x14   :  { %37 = dma.hbm_to_vmem [thread:$0]  %s1431_s1, 128, %s35_s28, [#allocation6]  }
  0x15   :  { %s1052_s21 = scalar_lea.hbm %s1433_s3, 2048 }
  0x16   :  { %p1053_p8 = scmp.ne.s32.totalorder %s1433_s3, %s1052_s21  ;;  %p1056_p9 = scmp.lt.u32.totalorder %s1052_s21, %s1433_s3 }
  0x18   :  { %p1058_p10 = pnand %p1056_p9, %p1053_p8 }
  0x1a   :  { %1061 = shalt.err (!%p1058_p10)
}
  0x1b   :  { %s1062_s26 = scalar_lea.vmem %s1278_s30, 2048  ;;  %p1067_p12 = scmp.lt.s32.totalorder %s1278_s30, %s1278_s30 }
  0x1c   :  { %p1063_p11 = scmp.ne.s32.totalorder %s1278_s30, %s1062_s26  ;;  %p1068_p13 = scmp.lt.s32.totalorder %s1062_s26, %s1062_s26 }
  0x1e   :  { %p1069_p0 = por %p1068_p13, %p1067_p12 }
  0x20   :  { %p1070_p1 = pnand %p1069_p0, %p1063_p11 }
  0x22   :  { %1073 = shalt.err (!%p1070_p1)
}
  0x23   :  { %s1218_s1 = smov 128   ;;  %s1219_s27 = smov 8  }
  0x24   :  { %59 = dma.hbm_to_vmem [thread:$0]  %s1433_s3, 2048, %s1278_s30, [#allocation9], %s1218_s1, %s1218_s1, %s1219_s27  }
  0x25   :  { %s1220_s9 = smov [#allocation11]   ;;  %s1074_s13 = scalar_lea.hbm %s1436_s6, 1024 }
  0x26   :  { %s79_s10 = sshll.u32 %s1220_s9, 4  ;;  %p1075_p2 = scmp.ne.s32.totalorder %s1436_s6, %s1074_s13  ;;  %s80_s10 = int_to_ptr.vmem [resolvable:$true] %s79_s10 }
  0x27   :  { %p1078_p3 = scmp.lt.u32.totalorder %s1074_s13, %s1436_s6 }
  0x29   :  { %p1080_p4 = pnand %p1078_p3, %p1075_p2 }
  0x2b   :  { %1083 = shalt.err (!%p1080_p4)
}
  0x2c   :  { %s1084_s18 = scalar_lea.vmem %s80_s10, 1024  ;;  %p1089_p6 = scmp.lt.s32.totalorder %s80_s10, %s80_s10 }
  0x2d   :  { %p1085_p5 = scmp.ne.s32.totalorder %s80_s10, %s1084_s18  ;;  %p1090_p7 = scmp.lt.s32.totalorder %s1084_s18, %s1084_s18 }
  0x2f   :  { %p1091_p8 = por %p1090_p7, %p1089_p6 }
  0x31   :  { %p1092_p9 = pnand %p1091_p8, %p1085_p5 }
  0x33   :  { %1095 = shalt.err (!%p1092_p9)
}
  0x34   :  { %s1221_s3 = smov 64   ;;  %s1222_s30 = smov 4  }
  0x35   :  { %85 = dma.hbm_to_vmem [thread:$0]  %s1436_s6, 1024, %s80_s10, [#allocation12], %s1221_s3, %s1221_s3, %s1222_s30  }
  0x36   :  { %s1223_s21 = smov [#allocation2]   ;;  %s1224_s23 = smov [#allocation7]  }
  0x37   :  { %s24_s22 = sshll.u32 %s1223_s21, 4  ;;  %s44_s24 = sshll.u32 %s1224_s23, 4  ;;  %s25_s22 = int_to_ptr.vmem [resolvable:$true] %s24_s22  ;;  %s45_s24 = int_to_ptr.vmem [resolvable:$true] %s44_s24 }
  0x38   :  { %s1096_s1 = scalar_lea.hbm %s1430_s0, 128 }
  0x39   :  { %p1097_p10 = scmp.ne.s32.totalorder %s1430_s0, %s1096_s1  ;;  %p1100_p11 = scmp.lt.u32.totalorder %s1096_s1, %s1430_s0 }
  0x3b   :  { %p1102_p12 = pnand %p1100_p11, %p1097_p10 }
  0x3d   :  { %1105 = shalt.err (!%p1102_p12)
}
  0x3e   :  { %s1106_s6 = scalar_lea.vmem %s25_s22, 128  ;;  %p1111_p0 = scmp.lt.s32.totalorder %s25_s22, %s25_s22 }
  0x3f   :  { %p1107_p13 = scmp.ne.s32.totalorder %s25_s22, %s1106_s6  ;;  %p1112_p1 = scmp.lt.s32.totalorder %s1106_s6, %s1106_s6 }
  0x41   :  { %p1113_p2 = por %p1112_p1, %p1111_p0 }
  0x43   :  { %p1114_p3 = pnand %p1113_p2, %p1107_p13 }
  0x45   :  { %1117 = shalt.err (!%p1114_p3)
}
  0x46   :  { %27 = dma.hbm_to_vmem [thread:$0]  %s1430_s0, 128, %s25_s22, [#allocation3]  }
  0x47   :  { %s1118_s14 = scalar_lea.hbm %s1432_s2, 128 }
  0x48   :  { %p1119_p4 = scmp.ne.s32.totalorder %s1432_s2, %s1118_s14  ;;  %p1122_p5 = scmp.lt.u32.totalorder %s1118_s14, %s1432_s2 }
  0x4a   :  { %p1124_p6 = pnand %p1122_p5, %p1119_p4 }
  0x4c   :  { %1127 = shalt.err (!%p1124_p6)
}
  0x4d   :  { %s1128_s19 = scalar_lea.vmem %s45_s24, 128  ;;  %p1133_p8 = scmp.lt.s32.totalorder %s45_s24, %s45_s24 }
  0x4e   :  { %p1129_p7 = scmp.ne.s32.totalorder %s45_s24, %s1128_s19  ;;  %p1134_p9 = scmp.lt.s32.totalorder %s1128_s19, %s1128_s19 }
  0x50   :  { %p1135_p10 = por %p1134_p9, %p1133_p8 }
  0x52   :  { %p1136_p11 = pnand %p1135_p10, %p1129_p7 }
  0x54   :  { %1139 = shalt.err (!%p1136_p11)
}
  0x55   :  { %47 = dma.hbm_to_vmem [thread:$0]  %s1432_s2, 128, %s45_s24, [#allocation6]  }
  0x56   :  { %s1225_s21 = smov [#allocation10]   ;;  %s1140_s26 = scalar_lea.hbm %s1434_s4, 3072 }
  0x57   :  { %s65_s22 = sshll.u32 %s1225_s21, 4  ;;  %p1141_p12 = scmp.ne.s32.totalorder %s1434_s4, %s1140_s26  ;;  %s66_s22 = int_to_ptr.vmem [resolvable:$true] %s65_s22 }
  0x58   :  { %p1144_p13 = scmp.lt.u32.totalorder %s1140_s26, %s1434_s4 }
  0x5a   :  { %p1146_p0 = pnand %p1144_p13, %p1141_p12 }
  0x5c   :  { %1149 = shalt.err (!%p1146_p0)
}
  0x5d   :  { %s1150_s9 = scalar_lea.vmem %s66_s22, 3072  ;;  %p1155_p2 = scmp.lt.s32.totalorder %s66_s22, %s66_s22 }
  0x5e   :  { %p1151_p1 = scmp.ne.s32.totalorder %s66_s22, %s1150_s9  ;;  %p1156_p3 = scmp.lt.s32.totalorder %s1150_s9, %s1150_s9 }
  0x60   :  { %p1157_p4 = por %p1156_p3, %p1155_p2 }
  0x62   :  { %p1158_p5 = pnand %p1157_p4, %p1151_p1 }
  0x64   :  { %1161 = shalt.err (!%p1158_p5)
}
  0x65   :  { %s1226_s2 = smov 192   ;;  %s1227_s24 = smov 12  }
  0x66   :  { %71 = dma.hbm_to_vmem [thread:$0]  %s1434_s4, 3072, %s66_s22, [#allocation9], %s1226_s2, %s1226_s2, %s1227_s24  }
  0x67   :  { %s1228_s11 = smov [#allocation13]   ;;  %s1162_s15 = scalar_lea.hbm %s1437_s7, 1024 }
  0x68   :  { %s91_s12 = sshll.u32 %s1228_s11, 4  ;;  %p1163_p6 = scmp.ne.s32.totalorder %s1437_s7, %s1162_s15  ;;  %s92_s12 = int_to_ptr.vmem [resolvable:$true] %s91_s12 }
  0x69   :  { %p1166_p7 = scmp.lt.u32.totalorder %s1162_s15, %s1437_s7 }
  0x6b   :  { %p1168_p8 = pnand %p1166_p7, %p1163_p6 }
  0x6d   :  { %1171 = shalt.err (!%p1168_p8)
}
  0x6e   :  { %s1172_s0 = scalar_lea.vmem %s92_s12, 1024  ;;  %p1177_p10 = scmp.lt.s32.totalorder %s92_s12, %s92_s12 }
  0x6f   :  { %p1173_p9 = scmp.ne.s32.totalorder %s92_s12, %s1172_s0  ;;  %p1178_p11 = scmp.lt.s32.totalorder %s1172_s0, %s1172_s0 }
  0x71   :  { %p1179_p12 = por %p1178_p11, %p1177_p10 }
  0x73   :  { %p1180_p13 = pnand %p1179_p12, %p1173_p9 }
  0x75   :  { %1183 = shalt.err (!%p1180_p13)
}
  0x76   :  { %97 = dma.hbm_to_vmem [thread:$0]  %s1437_s7, 1024, %s92_s12, [#allocation12], %s1221_s3, %s1221_s3, %s1222_s30  }
  0x77   :  { %1206 = dma.done.wait [#allocation3], 128  }
  0x78   :  { %1207 = vsyncadd [#allocation3], 4294967168 }
  0x79   :  { %1208 = dma.done.wait [#allocation6], 256  }
  0x7a   :  { %1209 = vsyncadd [#allocation6], 4294967040 }
  0x7b   :  { %1210 = dma.done.wait [#allocation9], 5120  }
  0x7c   :  { %1211 = vsyncadd [#allocation9], 4294962176 }
  0x7d   :  { %1212 = dma.done.wait [#allocation12], 2048  }
  0x7e   :  { %1213 = vsyncadd [#allocation12], 4294965248  ;;  %v1229_v0 = vmov 0   ;;  %v1230_v1 = vmov 0.0   ;;  %vm1231_vm0 = vmmov 0   ;;  %v123_v20 = vld [vmem:[#allocation7] sm:$0xff]  ;;  %v159_v56 = vlaneseq }
  0x7f   :  { %334 = vmatprep.mubr.bf16.mxu0 %v1229_v0  ;;  %856 = vmatprep.subr.bf16.mxu1 %v1230_v1  ;;  %v948_v2 = vld [vmem:[#allocation10 + $0x4] ss:$12 sps:$4 sm:$0xff]   ;;  %v950_v3 = vld [vmem:[#allocation10] ss:$12 sps:$4 sm:$0xff]   ;;  %v951_v4 = vld [vmem:[#allocation10 + $0x1c] ss:$12 sps:$4 sm:$0xff]   ;;  %v124_v24 = vpack.c.bf16 %v123_v20, %v123_v20 }
  0x80   :  { %872 = vmatprep.mubr.msk.bf16.mxu1 %vm1231_vm0, %v1230_v1  ;;  %302 = vmatprep.subr.bf16.mxu0 %v948_v2  ;;  %v953_v5 = vld [vmem:[#allocation10 + $0x18] ss:$12 sps:$4 sm:$0xff]   ;;  %v954_v6 = vld [vmem:[#allocation10 + $0x34] ss:$12 sps:$4 sm:$0xff]   ;;  %v956_v7 = vld [vmem:[#allocation10 + $0x30] ss:$12 sps:$4 sm:$0xff]  }
  0x81   :  { %303 = vmatpush1.bf16.msra.mxu0 %v950_v3  ;;  %v957_v8 = vld [vmem:[#allocation10 + $0x4c] ss:$12 sps:$4 sm:$0xff]   ;;  %v959_v9 = vld [vmem:[#allocation10 + $0x48] ss:$12 sps:$4 sm:$0xff]   ;;  %v960_v10 = vld [vmem:[#allocation10 + $0x64] ss:$12 sps:$4 sm:$0xff]  }
  0x82   :  { %304 = vmatprep.subr.bf16.mxu0 %v951_v4  ;;  %v962_v11 = vld [vmem:[#allocation10 + $0x60] ss:$12 sps:$4 sm:$0xff]   ;;  %v963_v12 = vld [vmem:[#allocation10 + $0x7c] ss:$12 sps:$4 sm:$0xff]   ;;  %v965_v13 = vld [vmem:[#allocation10 + $0x78] ss:$12 sps:$4 sm:$0xff]  }
  0x83   :  { %v966_v14 = vld [vmem:[#allocation10 + $0x94] ss:$12 sps:$4 sm:$0xff]   ;;  %v968_v15 = vld [vmem:[#allocation10 + $0x90] ss:$12 sps:$4 sm:$0xff]   ;;  %v969_v17 = vld [vmem:[#allocation10 + $0xac] ss:$12 sps:$4 sm:$0xff]  }
  0x84   :  { %v996_v16 = vld [vmem:[#allocation10 + $0x8] ss:$12 sps:$4 sm:$0xff]   ;;  %v997_v18 = vld [vmem:[#allocation10 + $0x20] ss:$12 sps:$4 sm:$0xff]   ;;  %v998_v22 = vld [vmem:[#allocation10 + $0x38] ss:$12 sps:$4 sm:$0xff]  }
  0x85   :  { %305 = vmatpush1.bf16.msra.mxu0 %v953_v5  ;;  %857 = vmatpush3.bf16.msra.mxu1 %v996_v16  ;;  %v971_v19 = vld [vmem:[#allocation10 + $0xa8] ss:$12 sps:$4 sm:$0xff]   ;;  %v974_v21 = vld [vmem:[#allocation8 + $0x4] ss:$8 sps:$4 sm:$0xff]   ;;  %v999_v26 = vld [vmem:[#allocation10 + $0x50] ss:$12 sps:$4 sm:$0xff]  }
  0x86   :  { %306 = vmatprep.subr.bf16.mxu0 %v954_v6  ;;  %858 = vmatprep.subr.bf16.mxu1 %v1230_v1  ;;  %v972_v23 = vld [vmem:[#allocation8] ss:$8 sps:$4 sm:$0xff]   ;;  %v977_v25 = vld [vmem:[#allocation8 + $0x14] ss:$8 sps:$4 sm:$0xff]   ;;  %v975_v27 = vld [vmem:[#allocation8 + $0x10] ss:$8 sps:$4 sm:$0xff]  }
  0x87   :  { %v980_v28 = vld [vmem:[#allocation8 + $0x24] ss:$8 sps:$4 sm:$0xff]   ;;  %v1000_v29 = vld [vmem:[#allocation10 + $0x68] ss:$12 sps:$4 sm:$0xff]   ;;  %v981_v33 = vld [vmem:[#allocation8 + $0x30] ss:$8 sps:$4 sm:$0xff]  }
  0x88   :  { %v978_v30 = vld [vmem:[#allocation8 + $0x20] ss:$8 sps:$4 sm:$0xff]   ;;  %v983_v31 = vld [vmem:[#allocation8 + $0x34] ss:$8 sps:$4 sm:$0xff]   ;;  %v986_v34 = vld [vmem:[#allocation8 + $0x44] ss:$8 sps:$4 sm:$0xff]  }
  0x89   :  { %307 = vmatpush1.bf16.msra.mxu0 %v956_v7  ;;  %859 = vmatpush3.bf16.msra.mxu1 %v997_v18  ;;  %v1001_v32 = vld [vmem:[#allocation10 + $0x80] ss:$12 sps:$4 sm:$0xff]   ;;  %v1002_v35 = vld [vmem:[#allocation10 + $0x98] ss:$12 sps:$4 sm:$0xff]   ;;  %v989_v37 = vld [vmem:[#allocation8 + $0x54] ss:$8 sps:$4 sm:$0xff]  }
  0x8a   :  { %308 = vmatprep.subr.bf16.mxu0 %v957_v8  ;;  %860 = vmatprep.subr.bf16.mxu1 %v1230_v1  ;;  %v984_v36 = vld [vmem:[#allocation8 + $0x40] ss:$8 sps:$4 sm:$0xff]   ;;  %v1003_v38 = vld [vmem:[#allocation10 + $0xb0] ss:$12 sps:$4 sm:$0xff]   ;;  %v992_v40 = vld [vmem:[#allocation8 + $0x64] ss:$8 sps:$4 sm:$0xff]  }
  0x8b   :  { %v987_v39 = vld [vmem:[#allocation8 + $0x50] ss:$8 sps:$4 sm:$0xff]   ;;  %v990_v41 = vld [vmem:[#allocation8 + $0x60] ss:$8 sps:$4 sm:$0xff]   ;;  %v995_v44 = vld [vmem:[#allocation8 + $0x74] ss:$8 sps:$4 sm:$0xff]  }
  0x8c   :  { %v1386_v42 = vld [vmem:[#allocation2] sm:$0xff]  ;;  %v121_v43 = vld [vmem:[#allocation5] sm:$0xff]  ;;  %v1004_v48 = vld [vmem:[#allocation13] sm:$0xff]   ;;  %v160_v57 = vshrl.u32 %v159_v56, 7 }
  0x8d   :  { %309 = vmatpush1.bf16.msra.mxu0 %v959_v9  ;;  %861 = vmatpush3.bf16.msra.mxu1 %v998_v22  ;;  %v1391_v45 = vadd.f32 %v121_v43, %v1386_v42  ;;  %v993_v46 = vld [vmem:[#allocation8 + $0x70] ss:$8 sps:$4 sm:$0xff]   ;;  %v1005_v49 = vld [vmem:[#allocation13 + $0x8] sm:$0xff]   ;;  %v1008_v52 = vld [vmem:[#allocation13 + $0x20] sm:$0xff]  }
  0x8e   :  { %310 = vmatprep.subr.bf16.mxu0 %v960_v10  ;;  %862 = vmatprep.subr.bf16.mxu1 %v1230_v1  ;;  %v1006_v50 = vld [vmem:[#allocation13 + $0x10] sm:$0xff]   ;;  %v1007_v51 = vld [vmem:[#allocation13 + $0x18] sm:$0xff]   ;;  %v1009_v53 = vld [vmem:[#allocation13 + $0x28] sm:$0xff]   ;;  %v161_v58 = vsub.s32 0, %v160_v57 }
  0x8f   :  { %v383_v47 = vpack.c.bf16 %v1391_v45, %v1391_v45  ;;  %v1010_v54 = vld [vmem:[#allocation13 + $0x30] sm:$0xff]   ;;  %v1011_v55 = vld [vmem:[#allocation13 + $0x38] sm:$0xff]   ;;  %v157_v59 = vld [vmem:[%s1435_s5] sm:$0x7]  ;;  %s1232_s5 = smov [#allocation14]  }
  0x90   :  { %v162_v60 = vrot.slane %v157_v59, %v161_v58  ;;  %v1012_v8 = vld [vmem:[#allocation11] sm:$0xff]   ;;  %v1013_v10 = vld [vmem:[#allocation11 + $0x8] sm:$0xff]   ;;  %v1019_v16 = vld [vmem:[#allocation11 + $0x38] sm:$0xff]   ;;  %s759_s30 = sshll.u32 %s1232_s5, 4  ;;  %s760_s30 = int_to_ptr.vmem [resolvable:$true] %s759_s30 }
  0x91   :  { %311 = vmatpush1.bf16.msra.mxu0 %v962_v11  ;;  %863 = vmatpush3.bf16.msra.mxu1 %v999_v26  ;;  %v1014_v11 = vld [vmem:[#allocation11 + $0x10] sm:$0xff]   ;;  %s1184_s21 = scalar_lea.vmem %s760_s30, 128  ;;  %p1189_p1 = scmp.lt.s32.totalorder %s760_s30, %s760_s30 }
  0x92   :  { %312 = vmatprep.subr.bf16.mxu0 %v963_v12  ;;  %864 = vmatprep.subr.bf16.mxu1 %v1230_v1  ;;  %v1015_v12 = vld [vmem:[#allocation11 + $0x18] sm:$0xff]   ;;  %p1185_p0 = scmp.ne.s32.totalorder %s760_s30, %s1184_s21  ;;  %p1190_p2 = scmp.lt.s32.totalorder %s1184_s21, %s1184_s21 }
  0x94   :  { %p1191_p3 = por %p1190_p2, %p1189_p1 }
  0x95   :  { %313 = vmatpush1.bf16.msra.mxu0 %v965_v13  ;;  %865 = vmatpush3.bf16.msra.mxu1 %v1000_v29  ;;  %v1016_v13 = vld [vmem:[#allocation11 + $0x20] sm:$0xff]  }
  0x96   :  { %314 = vmatprep.subr.bf16.mxu0 %v966_v14  ;;  %866 = vmatprep.subr.bf16.mxu1 %v1230_v1  ;;  %v1017_v14 = vld [vmem:[#allocation11 + $0x28] sm:$0xff]   ;;  %p1192_p4 = pnand %p1191_p3, %p1185_p0 }
  0x99   :  { %315 = vmatpush1.bf16.msra.mxu0 %v968_v15  ;;  %867 = vmatpush3.bf16.msra.mxu1 %v1001_v32  ;;  %v1018_v15 = vld [vmem:[#allocation11 + $0x30] sm:$0xff]  }
  0x9a   :  { %316 = vmatprep.subr.bf16.mxu0 %v969_v17  ;;  %868 = vmatprep.subr.bf16.mxu1 %v1230_v1 }
  0x9d   :  { %317 = vmatpush1.bf16.msra.mxu0 %v971_v19  ;;  %869 = vmatpush3.bf16.msra.mxu1 %v1002_v35  ;;  %v165_v19 = vsub.s32 1, %v160_v57 }
  0x9e   :  { %480 = vmatprep.subr.bf16.mxu0 %v974_v21  ;;  %870 = vmatprep.subr.bf16.mxu1 %v1230_v1 }
  0x9f   :  { %v166_v20 = vrot.slane %v157_v59, %v165_v19 }
  0xa0   :  { %335 = vmatmul.mubr.bf16.vlgmr.msra.gmra.mrb[0].mxu0 %v124_v24 }
  0xa1   :  { %481 = vmatpush1.bf16.msra.mxu0 %v972_v23  ;;  %512 = vmatprep.mubr.bf16.mxu0 %v1229_v0  ;;  %v169_v23 = vsub.s32 2, %v160_v57 }
  0xa2   :  { %482 = vmatprep.subr.bf16.mxu0 %v977_v25  ;;  %871 = vmatpush3.bf16.msra.mxu1 %v1003_v38 }
  0xa3   :  { %876 = vmatprep.subr.bf16.mxu1 %v1230_v1 }
  0xa5   :  { %483 = vmatpush1.bf16.msra.mxu0 %v975_v27  ;;  %873 = vmatmul.mubr.bf16.vlgmr.msra.gmra.mrb[0].mxu1 %v124_v24  ;;  %v170_v24 = vrot.slane %v157_v59, %v169_v23 }
  0xa6   :  { %484 = vmatprep.subr.bf16.mxu0 %v980_v28  ;;  %892 = vmatprep.mubr.msk.bf16.mxu1 %vm1231_vm0, %v1230_v1 }
  0xa7   :  { %877 = vmatpush3.bf16.msra.mxu1 %v1004_v48 }
  0xa8   :  { %878 = vmatprep.subr.bf16.mxu1 %v1230_v1 }
  0xa9   :  { %485 = vmatpush1.bf16.msra.mxu0 %v978_v30 }
  0xaa   :  { %486 = vmatprep.subr.bf16.mxu0 %v983_v31 }
  0xab   :  { %879 = vmatpush3.bf16.msra.mxu1 %v1005_v49 }
  0xac   :  { %880 = vmatprep.subr.bf16.mxu1 %v1230_v1 }
  0xad   :  { %487 = vmatpush1.bf16.msra.mxu0 %v981_v33 }
  0xae   :  { %488 = vmatprep.subr.bf16.mxu0 %v986_v34 }
  0xaf   :  { %881 = vmatpush3.bf16.msra.mxu1 %v1006_v50 }
  0xb0   :  { %882 = vmatprep.subr.bf16.mxu1 %v1230_v1 }
  0xb1   :  { %489 = vmatpush1.bf16.msra.mxu0 %v984_v36 }
  0xb2   :  { %490 = vmatprep.subr.bf16.mxu0 %v989_v37 }
  0xb3   :  { %883 = vmatpush3.bf16.msra.mxu1 %v1007_v51 }
  0xb4   :  { %884 = vmatprep.subr.bf16.mxu1 %v1230_v1 }
  0xb5   :  { %491 = vmatpush1.bf16.msra.mxu0 %v987_v39 }
  0xb6   :  { %492 = vmatprep.subr.bf16.mxu0 %v992_v40 }
  0xb7   :  { %885 = vmatpush3.bf16.msra.mxu1 %v1008_v52 }
  0xb8   :  { %886 = vmatprep.subr.bf16.mxu1 %v1230_v1 }
  0xb9   :  { %493 = vmatpush1.bf16.msra.mxu0 %v990_v41 }
  0xba   :  { %494 = vmatprep.subr.bf16.mxu0 %v995_v44 }
  0xbb   :  { %887 = vmatpush3.bf16.msra.mxu1 %v1009_v53 }
  0xbc   :  { %888 = vmatprep.subr.bf16.mxu1 %v1230_v1 }
  0xbd   :  { %495 = vmatpush1.bf16.msra.mxu0 %v993_v46 }
  0xbf   :  { %889 = vmatpush3.bf16.msra.mxu1 %v1010_v54 }
  0xc0   :  { %513 = vmatmul.mubr.bf16.vlgmr.msra.gmra.mrb[0].mxu0 %v383_v47  ;;  %890 = vmatprep.subr.bf16.mxu1 %v1230_v1 }
  0xc3   :  { %891 = vmatpush3.bf16.msra.mxu1 %v1011_v55 }
  0xc4   :  { %896 = vmatprep.subr.bf16.mxu1 %v1230_v1 }
 0x193   :  { %v514_v61 = vpop.f32.mrb[0].mxu0 }
 0x194   :  { %v916_v62 = vadd.f32 %v514_v61, %v162_v60  ;;  %v516_v63 = vpop.f32.mrb[1].mxu0 }
 0x195   :  { %v518_v0 = vpop.f32.mrb[2].mxu0  ;;  %v917_v21 = vadd.f32 %v516_v63, %v166_v20 }
 0x196   :  { %v811_v2 = vmul.f32 -1.442695, %v916_v62  ;;  %v519_v3 = vpop.f32.mrb[3].mxu0 }
 0x197   :  { %v812_v22 = vmul.f32 -1.442695, %v917_v21 }
 0x198   :  { %1020 = vpow2.f32 %v811_v2 }
 0x1a2   :  { %v1021_v4 = vpop.eup %1020 }
 0x1a3   :  { %v529_v5 = vadd.f32 1.0, %v1021_v4 }
 0x1a5   :  { %1022 = vrcp.f32 %v529_v5 }
 0x1a6   :  { %1024 = vpow2.f32 %v812_v22 }
 0x1af   :  { %v1023_v6 = vpop.eup %1022 }
 0x1b0   :  { %v553_v7 = vmul.f32 %v1023_v6, %v121_v43  ;;  %v535_v17 = vmul.f32 %v1023_v6, %v1386_v42  ;;  %v1025_v25 = vpop.eup %1024 }
 0x1b1   :  { %v530_v27 = vadd.f32 1.0, %v1025_v25 }
 0x1b2   :  { %v554_v9 = vpack.c.bf16 %v553_v7, %v553_v7  ;;  %v536_v18 = vpack.c.bf16 %v535_v17, %v535_v17 }
 0x1b4   :  { %893 = vmatmul.mubr.bf16.vlgmr.msra.gmra.mrb[0].mxu1 %v554_v9 }
 0x1b5   :  { %897 = vmatpush3.bf16.msra.mxu1 %v1012_v8  ;;  %912 = vmatprep.mubr.msk.bf16.mxu1 %vm1231_vm0, %v1230_v1 }
 0x1b6   :  { %898 = vmatprep.subr.bf16.mxu1 %v1230_v1 }
 0x1b9   :  { %899 = vmatpush3.bf16.msra.mxu1 %v1013_v10 }
 0x1ba   :  { %900 = vmatprep.subr.bf16.mxu1 %v1230_v1 }
 0x1bd   :  { %901 = vmatpush3.bf16.msra.mxu1 %v1014_v11 }
 0x1be   :  { %902 = vmatprep.subr.bf16.mxu1 %v1230_v1 }
 0x1c1   :  { %903 = vmatpush3.bf16.msra.mxu1 %v1015_v12 }
 0x1c2   :  { %904 = vmatprep.subr.bf16.mxu1 %v1230_v1 }
 0x1c5   :  { %905 = vmatpush3.bf16.msra.mxu1 %v1016_v13 }
 0x1c6   :  { %906 = vmatprep.subr.bf16.mxu1 %v1230_v1 }
 0x1c9   :  { %907 = vmatpush3.bf16.msra.mxu1 %v1017_v14 }
 0x1ca   :  { %908 = vmatprep.subr.bf16.mxu1 %v1230_v1 }
 0x1cd   :  { %909 = vmatpush3.bf16.msra.mxu1 %v1018_v15 }
 0x1ce   :  { %910 = vmatprep.subr.bf16.mxu1 %v1230_v1 }
 0x1d1   :  { %911 = vmatpush3.bf16.msra.mxu1 %v1019_v16 }
 0x1d4   :  { %913 = vmatmul.mubr.bf16.vlgmr.msra.gmra.mrb[0].mxu1 %v536_v18 }
 0x2a7   :  { %v741_v26 = vpop.f32.mrb[0].mxu1 }
 0x2a8   :  { %v918_v28 = vadd.f32 %v741_v26, %v170_v24  ;;  %v914_v29 = vpop.f32.mrb[1].mxu1 }
 0x2a9   :  { %v744_v30 = vpop.f32.mrb[2].mxu1 }
 0x2aa   :  { %1026 = vtanh.f32 %v918_v28  ;;  %v915_v1 = vpop.f32.mrb[3].mxu1 }
 0x2ab   :  { %1028 = vrcp.f32 %v530_v27 }
 0x2b4   :  { %v1027_v31 = vpop.eup %1026 }
 0x2b5   :  { %v749_v32 = vsub.f32 %v1027_v31, %v1391_v45  ;;  %v1029_v33 = vpop.eup %1028 }
 0x2b7   :  { %v750_v34 = vmul.f32 %v1029_v33, %v749_v32 }
 0x2b9   :  { %v751_v35 = vadd.f32 %v750_v34, %v1391_v45 }
 0x2bb   :  { %752 = vst [vmem:[#allocation14] sm:$0xff] %v751_v35 }
 0x2bc   :  { %1195 = shalt.err (!%p1192_p4)
}
 0x2bd   :  { %s1196_s25 = scalar_lea.hbm %s1438_s8, 128 }
 0x2be   :  { %p1197_p5 = scmp.ne.s32.totalorder %s1438_s8, %s1196_s25  ;;  %p1200_p6 = scmp.lt.u32.totalorder %s1196_s25, %s1438_s8 }
 0x2c0   :  { %p1202_p7 = pnand %p1200_p6, %p1197_p5 }
 0x2c2   :  { %1205 = shalt.err (!%p1202_p7)
}
 0x2c3   :  { %762 = dma.vmem_to_hbm [thread:$0]  %s760_s30, 128, %s1438_s8, [#allocation4]  }
 0x2c4   :  { %1214 = dma.done.wait [#allocation4], 128  }
 0x2c5   :  { %1215 = vsyncadd [#allocation4], 4294967168 }
 0x2c6   :  { %766 = vsyncpa [#allocation3], 1 }
 0x2c7   :  { %767 = vsyncpa [#allocation6], 1 }
 0x2c8   :  { %768 = vsyncpa [#allocation9], 1 }
 0x2c9   :  { %769 = vsyncpa [#allocation12], 1 }
 0x2ca   :  { %770 = vsyncpa [#allocation4], 1 }

</bundles_post_ra>
